<compile_context>
chip_gen: v7x
topology: tpu7x:2x2x1
jax: 0.10.0
libtpu: 0.0.40
codegen_flags: <defaults>
</compile_context>

<pallas_src>
import functools

import jax
import jax.numpy as jnp
from jax.experimental import pallas as pl
from jax.experimental.pallas import tpu as pltpu


def _round_up(v, m):
    return (v + m - 1) // m * m


def _focal_loss_kernel(x_ref, t_ref, o_ref, *, gamma, n_valid, c_valid,
                       n_pad, tiles_per_shard):
    tile_n, c_pad = x_ref.shape
    i = pl.program_id(1)

    @pl.when(i == 0)
    def _():
        o_ref[...] = jnp.zeros_like(o_ref)

    x = x_ref[...].astype(jnp.float32)
    t = t_ref[...].astype(jnp.float32)

    # Stable BCE-with-logits, sharing exp(-|x|):
    #   bce = x - x*t + softplus(-x);  softplus(-x) = max(-x, 0) + log1p(exp(-|x|))
    e_x = jnp.exp(-jnp.abs(x))
    bce = x * (1.0 - t) + jnp.maximum(-x, 0.0) + jnp.log1p(e_x)

    # Focal factor: exp(gamma * logsigmoid(-z)),  z = x * (2t - 1)
    z = x * (2.0 * t - 1.0)
    e_z = jnp.exp(-jnp.abs(z))
    g = float(gamma)
    if g >= 0.0 and g.is_integer() and int(g) <= 16:
        # == sigmoid(-z)**gamma : drops the log AND the second exp (EUP relief).
        inv = 1.0 / (1.0 + e_z)
        sig = jnp.where(z >= 0.0, e_z * inv, inv)
        factor = jnp.ones_like(sig)
        for _ in range(int(g)):
            factor = factor * sig
    else:
        # General (non-integer) gamma fallback: stable logsigmoid + exp.
        logsig = -(jnp.maximum(z, 0.0) + jnp.log1p(e_z))
        factor = jnp.exp(g * logsig)

    loss = factor * bce

    # Mask zero-padded rows / columns (focal loss of (x=0, t=0) is not 0).
    if n_pad > n_valid:
        row0 = (pl.program_id(0) * tiles_per_shard + i) * tile_n
        rows = jax.lax.broadcasted_iota(jnp.int32, (tile_n, c_pad), 0) + row0
        loss = jnp.where(rows < n_valid, loss, 0.0)
    if c_pad > c_valid:
        cols = jax.lax.broadcasted_iota(jnp.int32, (tile_n, c_pad), 1)
        loss = jnp.where(cols < c_valid, loss, 0.0)

    # Fold rows down to 8 sublanes with a log-depth tree of VPU adds
    # (tile_n is a power-of-two multiple of 8, so every slice is tile-aligned).
    part = loss
    while part.shape[0] > 8:
        half = part.shape[0] // 2
        part = part[:half, :] + part[half:, :]

    o_ref[...] += part


def focal_loss(x, t, gamma=2.0):
    if x.shape != t.shape:
        raise ValueError("Target size must be the same as input size")
    n, c = x.shape
    c_pad = _round_up(c, 128)

    num_shards = 2  # v7x megacore: shard rows across the 2 TensorCores.

    # Tile rows: power-of-two multiple of 8, with 2 inputs x 2 pipeline buffers
    # kept under ~16 MiB of VMEM (fits comfortably on v7x's 64 MiB VMEM).
    vmem_budget = 16 * 1024 * 1024
    cap = max(8, min(8192, vmem_budget // (2 * 2 * 4 * c_pad)))
    cap8 = max(1, cap // 8)
    tile_n_cap = (1 << (cap8.bit_length() - 1)) * 8  # power-of-two multiple of 8

    rows_per_shard = _round_up(pl.cdiv(n, num_shards), 8)
    tile_n = 8
    while tile_n < rows_per_shard and tile_n < tile_n_cap:
        tile_n *= 2
    tiles_per_shard = pl.cdiv(rows_per_shard, tile_n)
    n_pad = num_shards * tiles_per_shard * tile_n

    if (n_pad, c_pad) != (n, c):
        x = jnp.pad(x, ((0, n_pad - n), (0, c_pad - c)))
        t = jnp.pad(t, ((0, n_pad - n), (0, c_pad - c)))

    kernel = functools.partial(
        _focal_loss_kernel, gamma=float(gamma), n_valid=n, c_valid=c,
        n_pad=n_pad, tiles_per_shard=tiles_per_shard)

    in_bytes = jnp.dtype(x.dtype).itemsize
    cost = pl.CostEstimate(
        flops=15 * n * c,
        transcendentals=3 * n * c,
        bytes_accessed=2 * n * c * in_bytes + num_shards * 8 * c_pad * 4)

    idx_map = lambda s, i: (s * tiles_per_shard + i, 0)
    partial_sums = pl.pallas_call(
        kernel,
        out_shape=jax.ShapeDtypeStruct((num_shards * 8, c_pad), jnp.float32),
        grid=(num_shards, tiles_per_shard),
        in_specs=[
            pl.BlockSpec((tile_n, c_pad), idx_map),
            pl.BlockSpec((tile_n, c_pad), idx_map),
        ],
        out_specs=pl.BlockSpec((8, c_pad), lambda s, i: (s, 0)),
        compiler_params=pltpu.CompilerParams(
            dimension_semantics=("parallel", "arbitrary"),
            vmem_limit_bytes=32 * 1024 * 1024),
        cost_estimate=cost,
    )(x, t)

    # loss.sum(dim=1).mean() over (N, C) == total_sum / N; tiny final reduce in JAX.
    return jnp.sum(partial_sums) / jnp.float32(n)


def focal_loss_ref(x, t, gamma=2.0):
    x = x.astype(jnp.float32)
    t = t.astype(jnp.float32)
    max_val = jnp.maximum(-x, 0.0)
    loss = x - x * t + max_val + jnp.log(jnp.exp(-max_val) + jnp.exp(-x - max_val))
    invprobs = jax.nn.log_sigmoid(-x * (t * 2.0 - 1.0))
    loss = jnp.exp(invprobs * gamma) * loss
    return jnp.mean(jnp.sum(loss, axis=1))


if __name__ == "__main__":
    key = jax.random.PRNGKey(0)
    k1, k2, k3, k4 = jax.random.split(key, 4)

    # Case 1: unaligned shape -> exercises row + column padding/masking.
    n1, c1 = 20, 96
    x1 = jax.random.normal(k1, (n1, c1), dtype=jnp.float32) * 2.0
    t1 = jax.random.bernoulli(k2, 0.3, (n1, c1)).astype(jnp.float32)
    out1 = jax.block_until_ready(focal_loss(x1, t1, gamma=2.0))
    ref1 = focal_loss_ref(x1, t1, gamma=2.0)
    assert jnp.allclose(out1, ref1, rtol=1e-5, atol=1e-5), (out1, ref1)

    # Case 2: aligned shape -> no padding path.
    n2, c2 = 64, 128
    x2 = jax.random.normal(k3, (n2, c2), dtype=jnp.float32) * 2.0
    t2 = jax.random.bernoulli(k4, 0.3, (n2, c2)).astype(jnp.float32)
    out2 = jax.block_until_ready(focal_loss(x2, t2, gamma=2.0))
    ref2 = focal_loss_ref(x2, t2, gamma=2.0)
    assert jnp.allclose(out2, ref2, rtol=1e-5, atol=1e-5), (out2, ref2)

    print("KERNEL_OK")
</pallas_src>

<mosaic_0001>
module attributes {stable_mosaic.version = 11 : i64} {
  func.func @_focal_loss_kernel(%arg0: i32, %arg1: i32, %arg2: memref<16x128xf32, #tpu.memory_space<vmem>>, %arg3: memref<16x128xf32, #tpu.memory_space<vmem>>, %arg4: memref<8x128xf32, #tpu.memory_space<vmem>>) attributes {dimension_semantics = [#tpu.dimension_semantics<parallel>, #tpu.dimension_semantics<arbitrary>], iteration_bounds = array<i64: 2, 1>, scalar_prefetch = 0 : i64, scratch_operands = 0 : i64, tpu.core_type = #tpu.core_type<tc>, window_params = [{transform_indices = @transform_0, window_bounds = array<i64: 16, 128>}, {transform_indices = @transform_1, window_bounds = array<i64: 16, 128>}, {transform_indices = @transform_2, window_bounds = array<i64: 8, 128>}]} {
    %c0_i32 = arith.constant 0 : i32
    %0 = arith.cmpi eq, %arg1, %c0_i32 : i32
    %1 = arith.extui %0 : i1 to i32
    %c0_i32_0 = arith.constant 0 : i32
    %2 = arith.cmpi ne, %1, %c0_i32_0 : i32
    scf.if %2 {
      %cst_20 = arith.constant 0.000000e+00 : f32
      %61 = vector.broadcast %cst_20 : f32 to vector<8x128xf32>
      %c0_21 = arith.constant 0 : index
      %c0_22 = arith.constant 0 : index
      %62 = vector.load %arg4[%c0_21, %c0_22] : memref<8x128xf32, #tpu.memory_space<vmem>>, vector<8x128xf32>
      tpu.vector_store %arg4[%c0_21, %c0_22], %61 {strides = array<i32>} : memref<8x128xf32, #tpu.memory_space<vmem>>, vector<8x128xf32>,
    } else {
    }
    %c0 = arith.constant 0 : index
    %c0_1 = arith.constant 0 : index
    %3 = vector.load %arg2[%c0, %c0_1] : memref<16x128xf32, #tpu.memory_space<vmem>>, vector<16x128xf32>
    %c0_2 = arith.constant 0 : index
    %c0_3 = arith.constant 0 : index
    %4 = vector.load %arg3[%c0_2, %c0_3] : memref<16x128xf32, #tpu.memory_space<vmem>>, vector<16x128xf32>
    %5 = math.absf %3 : vector<16x128xf32>
    %cst = arith.constant 0.000000e+00 : f32
    %6 = vector.broadcast %cst : f32 to vector<16x128xf32>
    %7 = arith.subf %6, %5 : vector<16x128xf32>
    %8 = math.exp %7 : vector<16x128xf32>
    %cst_4 = arith.constant 1.000000e+00 : f32
    %9 = vector.broadcast %cst_4 : f32 to vector<16x128xf32>
    %10 = arith.subf %9, %4 : vector<16x128xf32>
    %11 = arith.mulf %3, %10 : vector<16x128xf32>
    %cst_5 = arith.constant 0.000000e+00 : f32
    %12 = vector.broadcast %cst_5 : f32 to vector<16x128xf32>
    %13 = arith.subf %12, %3 : vector<16x128xf32>
    %cst_6 = arith.constant 0.000000e+00 : f32
    %14 = vector.broadcast %cst_6 : f32 to vector<16x128xf32>
    %15 = arith.maximumf %13, %14 : vector<16x128xf32>
    %16 = arith.addf %11, %15 : vector<16x128xf32>
    %17 = math.log1p %8 : vector<16x128xf32>
    %18 = arith.addf %16, %17 : vector<16x128xf32>
    %cst_7 = arith.constant 2.000000e+00 : f32
    %19 = vector.broadcast %cst_7 : f32 to vector<16x128xf32>
    %20 = arith.mulf %19, %4 : vector<16x128xf32>
    %cst_8 = arith.constant 1.000000e+00 : f32
    %21 = vector.broadcast %cst_8 : f32 to vector<16x128xf32>
    %22 = arith.subf %20, %21 : vector<16x128xf32>
    %23 = arith.mulf %3, %22 : vector<16x128xf32>
    %24 = math.absf %23 : vector<16x128xf32>
    %cst_9 = arith.constant 0.000000e+00 : f32
    %25 = vector.broadcast %cst_9 : f32 to vector<16x128xf32>
    %26 = arith.subf %25, %24 : vector<16x128xf32>
    %27 = math.exp %26 : vector<16x128xf32>
    %cst_10 = arith.constant 1.000000e+00 : f32
    %28 = vector.broadcast %cst_10 : f32 to vector<16x128xf32>
    %29 = arith.addf %28, %27 : vector<16x128xf32>
    %cst_11 = arith.constant 1.000000e+00 : f32
    %30 = vector.broadcast %cst_11 : f32 to vector<16x128xf32>
    %31 = arith.divf %30, %29 : vector<16x128xf32>
    %cst_12 = arith.constant 0.000000e+00 : f32
    %32 = vector.broadcast %cst_12 : f32 to vector<16x128xf32>
    %33 = arith.cmpf oge, %23, %32 : vector<16x128xf32>
    %34 = arith.mulf %27, %31 : vector<16x128xf32>
    %35 = arith.select %33, %34, %31 : vector<16x128xi1>, vector<16x128xf32>
    %cst_13 = arith.constant 1.000000e+00 : f32
    %36 = vector.broadcast %cst_13 : f32 to vector<16x128xf32>
    %37 = arith.mulf %36, %35 : vector<16x128xf32>
    %38 = arith.mulf %37, %35 : vector<16x128xf32>
    %39 = arith.mulf %38, %18 : vector<16x128xf32>
    %c1_i32 = arith.constant 1 : i32
    %40 = arith.muli %arg0, %c1_i32 : i32
    %41 = arith.addi %40, %arg1 : i32
    %c16_i32 = arith.constant 16 : i32
    %42 = arith.muli %41, %c16_i32 : i32
    %43 = tpu.iota {dimensions = array<i32: 0>} : vector<16x128xi32>
    %44 = vector.broadcast %42 : i32 to vector<16x128xi32>
    %45 = arith.addi %43, %44 : vector<16x128xi32>
    %c20_i32 = arith.constant 20 : i32
    %46 = vector.broadcast %c20_i32 : i32 to vector<16x128xi32>
    %47 = arith.cmpi slt, %45, %46 : vector<16x128xi32>
    %cst_14 = arith.constant 0.000000e+00 : f32
    %48 = vector.broadcast %cst_14 : f32 to vector<16x128xf32>
    %49 = arith.select %47, %39, %48 : vector<16x128xi1>, vector<16x128xf32>
    %50 = tpu.iota {dimensions = array<i32: 1>} : vector<16x128xi32>
    %c96_i32 = arith.constant 96 : i32
    %51 = vector.broadcast %c96_i32 : i32 to vector<16x128xi32>
    %52 = arith.cmpi slt, %50, %51 : vector<16x128xi32>
    %cst_15 = arith.constant 0.000000e+00 : f32
    %53 = vector.broadcast %cst_15 : f32 to vector<16x128xf32>
    %54 = arith.select %52, %49, %53 : vector<16x128xi1>, vector<16x128xf32>
    %55 = vector.extract_strided_slice %54 {offsets = [0, 0], sizes = [8, 128], strides = [1, 1]} : vector<16x128xf32> to vector<8x128xf32>
    %56 = vector.extract_strided_slice %54 {offsets = [8, 0], sizes = [8, 128], strides = [1, 1]} : vector<16x128xf32> to vector<8x128xf32>
    %57 = arith.addf %55, %56 : vector<8x128xf32>
    %c0_16 = arith.constant 0 : index
    %c0_17 = arith.constant 0 : index
    %58 = vector.load %arg4[%c0_16, %c0_17] : memref<8x128xf32, #tpu.memory_space<vmem>>, vector<8x128xf32>
    %59 = arith.addf %58, %57 : vector<8x128xf32>
    %c0_18 = arith.constant 0 : index
    %c0_19 = arith.constant 0 : index
    %60 = vector.load %arg4[%c0_18, %c0_19] : memref<8x128xf32, #tpu.memory_space<vmem>>, vector<8x128xf32>
    tpu.vector_store %arg4[%c0_18, %c0_19], %59 {strides = array<i32>} : memref<8x128xf32, #tpu.memory_space<vmem>>, vector<8x128xf32>,
    return
  }
  func.func @transform_0(%arg0: i32, %arg1: i32) -> (i32, i32) {
    %c1_i32 = arith.constant 1 : i32
    %0 = arith.muli %arg0, %c1_i32 : i32
    %1 = arith.addi %0, %arg1 : i32
    %c0_i32 = arith.constant 0 : i32
    %c0_i32_0 = arith.constant 0 : i32
    return %1, %c0_i32 : i32, i32
  }
  func.func @transform_1(%arg0: i32, %arg1: i32) -> (i32, i32) {
    %c1_i32 = arith.constant 1 : i32
    %0 = arith.muli %arg0, %c1_i32 : i32
    %1 = arith.addi %0, %arg1 : i32
    %c0_i32 = arith.constant 0 : i32
    %c0_i32_0 = arith.constant 0 : i32
    return %1, %c0_i32 : i32, i32
  }
  func.func @transform_2(%arg0: i32, %arg1: i32) -> (i32, i32) {
    %c0_i32 = arith.constant 0 : i32
    %c0_i32_0 = arith.constant 0 : i32
    return %arg0, %c0_i32 : i32, i32
  }
}

</mosaic_0001>

<bundles_post_ra>
// kernel: tpu_custom_call.1
= control target key start
LH: loop header
LB: loop body
LE: loop exit
PB: predicated region body
PF: predicated region fallthrough
CT: control target
= control target key end

     0   :  { %7 = vsyncpa [#allocation3], 0  ;;  %s972_s0 = inlined_call_operand.hbm [shape: f32[32,128], index: 0, kind: input, shape index: {}]   ;;  %s973_s1 = inlined_call_operand.hbm [shape: f32[32,128], index: 1, kind: input, shape index: {}]   ;;  %s974_s2 = inlined_call_operand.hbm [shape: f32[16,128], index: 2, kind: output, shape index: {}]  }
   0x1   :  { %9 = vsyncpa [#allocation3 + $0x1], 0 }
   0x2   :  { %10 = vsyncpa [#allocation6], 0 }
   0x3   :  { %12 = vsyncpa [#allocation6 + $0x1], 0 }
   0x4   :  { %13 = vsyncpa [#allocation4], 0 }
   0x5   :  { %15 = vsyncpa [#allocation4 + $0x1], 0  ;;  %s716_s9 = smov 0   ;;  %s718_s10 = smov 0  }
   0x6   :  { %s720_s11 = smov 0   ;;  %s722_s12 = smov 0  }
   0x7   :  { %s724_s13 = smov 0   ;;  %s726_s14 = smov 0  }
   0x8 LB: > { %s439_s15 = sadd.s32 4294967295, %s694_s14   ;;  %s440_s16 = sadd.s32 4294967294, %s694_s14   ;;  %s694_s14 = sphi %s726_s14, %s21_s14   ;;  %s690_s13 = sphi %s724_s13, %s996_s13   ;;  %s686_s12 = sphi %s722_s12, %s995_s12   ;;  %s682_s11 = sphi %s720_s11, %s994_s11   ;;  %s678_s10 = sphi %s718_s10, %s993_s10   ;;  %s674_s9 = sphi %s716_s9, %s992_s9  }
   0x9   : > { %s33_s17 = sadd.s32 1, %s690_s13  ;;  %s42_s18 = sadd.s32 1, %s682_s11 }
   0xa   : > { %p35_p0 = scmp.ge.s32.totalorder %s33_s17, 2  ;;  %p49_p1 = scmp.ne.s32.totalorder %s682_s11, %s678_s10 }
   0xb   : > { %p50_p2 = scmp.eq.s32.totalorder %s694_s14, 0  ;;  %p55_p3 = scmp.ne.s32.totalorder %s678_s10, %s674_s9 }
   0xc   : > { %s998_s17 = smov (%p35_p0, %s33_s17), 0  ;;  %p56_p5 = scmp.eq.s32.totalorder %s439_s15, 0 }
   0xd   : > { %p757_p4 = por %p50_p2, %p49_p1  ;;  %s39_s20 = ssub.s32 %s690_s13, %s998_s17 }
   0xe   : > { %p107_p6 = scmp.eq.s32.totalorder %s439_s15, 1  ;;  %p40_p7 = scmp.eq.s32.totalorder %s39_s20, 0 }
   0xf   : > { %p763_p8 = por %p56_p5, %p55_p3  ;;  %p113_p10 = scmp.eq.s32.totalorder %s440_s16, 1 }
  0x10   : > { %p767_p9 = por %p107_p6, %p49_p1  ;;  %p479_p13 = scmp.lt.s32.totalorder %s694_s14, 2 }
  0x11   : > { %s978_s21 = scalar_select %p763_p8, 1, 0 }
  0x12   : > { %s979_s22 = scalar_select %p767_p9, 1, 0 }
  0x13   : > { %s772_s23 = scalar_select %p40_p7, %s682_s11, %s42_s18  }
  0x14   : > { %p774_p11 = por %p113_p10, %p55_p3  ;;  %s781_s25 = sand.u32 1, %s682_s11  }
  0x15   : > { %s443_s26 = sshll.u32 %s781_s25, 4  ;;  %s460_s27 = sshll.u32 %s690_s13, 8 }
  0x16   : > { %s980_s24 = scalar_select %p774_p11, 1, 0 }
  0x17   : > { %s790_s30 = scalar_lea.hbm %s972_s0, %s460_s27  ;;  %s137_s3 = scalar_lea.vmem [#allocation2], %s443_s26 }
  0x18   : > { %s145_s4 = sshll.u32 %s137_s3, 4  ;;  %p798_p0 = pnand %p479_p13, %p757_p4  ;;  %s794_s4 = int_to_ptr.vmem [resolvable:$true] %s145_s4 }
  0x19   : > { %s134_s6 = scalar_lea.sflag [#allocation3], %s781_s25  ;;  %s548_s7 = scalar_lea.hbm %s790_s30, 256 }
  0x1a   : > { %p549_p2 = scmp.ne.s32.totalorder %s790_s30, %s548_s7  ;;  %p550_p3 = pneg %p798_p0 }
  0x1b   : > { %s553_s16 = scalar_lea.hbm %s972_s0, 512  ;;  %p554_p4 = scmp.lt.u32.totalorder %s790_s30, %s972_s0 }
  0x1c   : > { %p551_p5 = pnand %p550_p3, %p549_p2  ;;  %p555_p7 = scmp.lt.u32.totalorder %s553_s16, %s548_s7 }
  0x1d   : > { %p557_p13 = scmp.lt.u32.totalorder %s548_s7, %s790_s30 }
  0x1e   : > { %p552_p6 = pneg %p551_p5  ;;  %p556_p10 = por %p555_p7, %p554_p4 }
  0x20   : > { %p558_p12 = por %p557_p13, %p556_p10 }
  0x22   : > { %p559_p1 = pnand %p558_p12, %p552_p6 }
  0x24   : > { %562 = shalt.err (!%p559_p1)
}
  0x25   : > { %s563_s20 = scalar_lea.vmem %s794_s4, 256  ;;  %s696_s28 = smov [#allocation2]  }
  0x26   : > { %p564_p2 = scmp.ne.s32.totalorder %s794_s4, %s563_s20  ;;  %s568_s29 = sshll.u32 %s696_s28, 4  ;;  %s569_s29 = int_to_ptr.vmem [resolvable:$false] %s568_s29 }
  0x27   : > { %s570_s3 = scalar_lea.vmem %s569_s29, 512  ;;  %p571_p9 = scmp.lt.s32.totalorder %s794_s4, %s569_s29 }
  0x28   : > { %p566_p5 = pnand %p564_p2, %p550_p3  ;;  %p572_p4 = scmp.lt.s32.totalorder %s570_s3, %s563_s20 }
  0x2a   : > { %p567_p11 = pneg %p566_p5  ;;  %p573_p7 = por %p572_p4, %p571_p9 }
  0x2c   : > { %p574_p10 = pnand %p573_p7, %p567_p11 }
  0x2e   : > { %577 = shalt.err (!%p574_p10)
}
  0x2f   : > { %s697_s7 = smov 128   ;;  %s698_s8 = smov 8  }
  0x30   : > { %471 = dma.hbm_to_vmem [thread:$0]  (!%p798_p0), %s790_s30, 256, %s794_s4, %s134_s6, %s697_s7, %s697_s7, %s698_s8  }
  0x31   : > { %p175_p9 = scmp.lt.s32.totalorder %s694_s14, 3  ;;  %s840_s18 = scalar_lea.hbm %s973_s1, %s460_s27 }
  0x32   : > { %p982_p11 = scmp.ge.s32.totalorder %s694_s14, 1  ;;  %s159_s20 = scalar_lea.vmem [#allocation5], %s443_s26 }
  0x33   : > { %s167_s28 = sshll.u32 %s159_s20, 4  ;;  %s156_s30 = scalar_lea.sflag [#allocation6], %s781_s25  ;;  %s850_s28 = int_to_ptr.vmem [resolvable:$true] %s167_s28 }
  0x34   : > { %p844_p12 = pnand %p982_p11, %p175_p9  ;;  %s578_s4 = scalar_lea.hbm %s840_s18, 256 }
  0x35   : > { %p579_p1 = scmp.ne.s32.totalorder %s840_s18, %s578_s4  ;;  %s583_s29 = scalar_lea.hbm %s973_s1, 512 }
  0x36   : > { %p584_p2 = scmp.lt.u32.totalorder %s840_s18, %s973_s1  ;;  %p585_p5 = scmp.lt.u32.totalorder %s583_s29, %s578_s4 }
  0x37   : > { %p581_p6 = pnand %p579_p1, %p550_p3  ;;  %p587_p7 = scmp.lt.u32.totalorder %s578_s4, %s840_s18 }
  0x38   : > { %p586_p4 = por %p585_p5, %p584_p2 }
  0x39   : > { %p582_p13 = pneg %p581_p6 }
  0x3a   : > { %p588_p10 = por %p587_p7, %p586_p4 }
  0x3c   : > { %p589_p9 = pnand %p588_p10, %p582_p13 }
  0x3e   : > { %592 = shalt.err (!%p589_p9)
}
  0x3f   : > { %s593_s26 = scalar_lea.vmem %s850_s28, 256  ;;  %s699_s16 = smov [#allocation5]  }
  0x40   : > { %p594_p11 = scmp.ne.s32.totalorder %s850_s28, %s593_s26  ;;  %s598_s20 = sshll.u32 %s699_s16, 4  ;;  %s599_s20 = int_to_ptr.vmem [resolvable:$false] %s598_s20 }
  0x41   : > { %s600_s27 = scalar_lea.vmem %s599_s20, 512  ;;  %p601_p8 = scmp.lt.s32.totalorder %s850_s28, %s599_s20 }
  0x42   : > { %p596_p1 = pnand %p594_p11, %p550_p3  ;;  %p602_p2 = scmp.lt.s32.totalorder %s600_s27, %s593_s26 }
  0x44   : > { %p597_p6 = pneg %p596_p1  ;;  %p603_p5 = por %p602_p2, %p601_p8 }
  0x46   : > { %p604_p4 = pnand %p603_p5, %p597_p6 }
  0x48   : > { %607 = shalt.err (!%p604_p4)
}
  0x49   : > { %474 = dma.hbm_to_vmem [thread:$0]  (!%p798_p0), %s840_s18, 256, %s850_s28, %s156_s30, %s697_s7, %s697_s7, %s698_s8  }
  0x4a   : > { %179 = sbr.rel (%p844_p12) target bundleno = 148 (0x94), region = 28  ;;  %s884_s4 = sand.u32 (!%p844_p12), 1, %s678_s10  }
  0x4b   : > { %s450_s6 = sshll.u32 (!%p844_p12), %s884_s4, 4  ;;  %s182_s29 = scalar_lea.sflag (!%p844_p12), [#allocation3], %s884_s4 }
  0x4c   : > { %s185_s5 = scalar_lea.vmem (!%p844_p12), [#allocation2], %s450_s6  ;;  %p984_p8 = scmp.ne.s32.totalorder (!%p844_p12), %s978_s21, 0 }
  0x51   : > { %661 = dma.done.wait (%p984_p8), %s182_s29, 256  }
  0x52   : > { %663 = vsyncadd (%p984_p8), %s182_s29, 4294967040  ;;  %s191_s25 = scalar_lea.sflag [#allocation6], %s884_s4  ;;  %s194_s7 = scalar_lea.vmem [#allocation5], %s450_s6 }
  0x53   : > { %665 = dma.done.wait (%p984_p8), %s191_s25, 256  }
  0x54   : > { %667 = vsyncadd (%p984_p8), %s191_s25, 4294967040  ;;  %v229_v0 = vld [vmem:[%s185_s5] sm:$0xff]  ;;  %v230_v1 = vld [vmem:[%s185_s5 + $0x8] sm:$0xff]  ;;  %v303_v34 = vlaneseq  ;;  %s455_s21 = sshll.u32 %s686_s12, 4  ;;  %s452_s8 = sshll.u32 %s884_s4, 3 }
  0x55   : > { %v231_v2 = vld [vmem:[%s194_s7] sm:$0xff]  ;;  %v232_v3 = vld [vmem:[%s194_s7 + $0x8] sm:$0xff]  ;;  %v233_v4 = vand.u32 2147483647, %v229_v0  ;;  %v234_v5 = vand.u32 2147483647, %v230_v1  ;;  %v306_v56 = vstv %s455_s21 }
  0x56   : > { %v271_v6 = vmul.f32 2.0, %v231_v2  ;;  %v272_v9 = vmul.f32 2.0, %v232_v3  ;;  %v241_v32 = vsub.f32 1.0, %v231_v2  ;;  %v245_v33 = vsub.f32 0.0, %v229_v0  ;;  %s457_s18 = sshll.u32 %s686_s12, 7  ;;  %s219_s19 = scalar_lea.vmem [#allocation7], %s452_s8 }
  0x57   : > { %v235_v7 = vsub.f32 0.0, %v233_v4  ;;  %v236_v8 = vsub.f32 0.0, %v234_v5  ;;  %v242_v35 = vsub.f32 1.0, %v232_v3  ;;  %v246_v36 = vsub.f32 0.0, %v230_v1  ;;  %s336_s28 = sshll.u32 %s219_s19, 4  ;;  %s923_s15 = scalar_lea.hbm %s974_s2, %s457_s18  ;;  %s925_s28 = int_to_ptr.vmem [resolvable:$true] %s336_s28 }
  0x58   : > { %v453_v10 = vadd.f32 -1.0, %v271_v6  ;;  %v454_v13 = vadd.f32 -1.0, %v272_v9  ;;  %v243_v43 = vmul.f32 %v241_v32, %v229_v0  ;;  %v247_v44 = vmax.f32 %v245_v33, 0.0  ;;  %s323_s26 = scalar_lea.sflag [#allocation4], %s884_s4  ;;  %s608_s16 = scalar_lea.vmem %s925_s28, 128 }
  0x59   : > { %v237_v11 = vmul.f32 1.442695, %v235_v7  ;;  %v239_v12 = vmul.f32 1.442695, %v236_v8  ;;  %v304_v45 = vshrl.u32 %v303_v34, 7  ;;  %v244_v46 = vmul.f32 %v242_v35, %v230_v1  ;;  %p609_p0 = scmp.ne.s32.totalorder %s925_s28, %s608_s16  ;;  %p989_p3 = scmp.ne.s32.totalorder %s979_s22, 0 }
  0x5a   : > { %v897_v14 = vmul.f32 %v453_v10, %v229_v0  ;;  %v899_v15 = vmul.f32 %v454_v13, %v230_v1  ;;  %v248_v47 = vmax.f32 %v246_v36, 0.0  ;;  %v249_v54 = vadd.f32 %v247_v44, %v243_v43  ;;  %s700_s12 = smov [#allocation7]  }
  0x5b   : > { %532 = vpow2.f32 %v237_v11  ;;  %v305_v55 = vadd.s32 8, %v304_v45  ;;  %v307_v63 = vadd.s32 %v306_v56, %v304_v45  ;;  %v314_v3 = vand.u32 127, %v303_v34  ;;  %p610_p12 = pnand %p609_p0, %p989_p3  ;;  %s612_s20 = sshll.u32 %s700_s12, 4  ;;  %s613_s20 = int_to_ptr.vmem [resolvable:$false] %s612_s20 }
  0x5c   : > { %534 = vpow2.f32 %v239_v12  ;;  %v277_v16 = vand.u32 2147483647, %v897_v14  ;;  %v278_v17 = vand.u32 2147483647, %v899_v15  ;;  %v250_v57 = vadd.f32 %v248_v47, %v244_v46  ;;  %s614_s27 = scalar_lea.vmem %s613_s20, 256  ;;  %p615_p7 = scmp.lt.s32.totalorder %s925_s28, %s613_s20 }
  0x5d   : > { %vm291_vm2 = vcmp.ge.f32.partialorder %v897_v14, 0.0  ;;  %vm292_vm3 = vcmp.ge.f32.partialorder %v899_v15, 0.0  ;;  %v308_v2 = vadd.s32 %v306_v56, %v305_v55  ;;  %vm309_vm4 = vcmp.lt.s32.totalorder %v307_v63, 20  ;;  %p611_p13 = pneg %p610_p12  ;;  %p616_p10 = scmp.lt.s32.totalorder %s614_s27, %s608_s16 }
  0x5e   : > { %v279_v18 = vsub.f32 0.0, %v277_v16  ;;  %v280_v19 = vsub.f32 0.0, %v278_v17  ;;  %vm315_vm6 = vcmp.lt.s32.totalorder %v314_v3, 96 }
  0x5f   : > { %vm310_vm5 = vcmp.lt.s32.totalorder %v308_v2, 20  ;;  %p617_p9 = por %p616_p10, %p615_p7 }
  0x60   : > { %v281_v20 = vmul.f32 1.442695, %v279_v18  ;;  %v283_v21 = vmul.f32 1.442695, %v280_v19 }
  0x61   : > { %p618_p11 = pnand %p617_p9, %p611_p13 }
  0x62   : > { %536 = vpow2.f32 %v281_v20 }
  0x63   : > { %538 = vpow2.f32 %v283_v21 }
  0x65   : > { %v533_v22 = vpop.eup %532 }
  0x66   : > { %v535_v23 = vpop.eup %534  ;;  %v251_v24 = vadd.f32 1.0, %v533_v22  ;;  %v254_v27 = vmul.f32 -0.5, %v533_v22  ;;  %v257_v38 = vand.u32 2147483647, %v533_v22 }
  0x67   : > { %v260_v25 = vadd.f32 1.0, %v535_v23  ;;  %v263_v29 = vmul.f32 -0.5, %v535_v23  ;;  %v266_v41 = vand.u32 2147483647, %v535_v23 }
  0x68   : > { %540 = vlog2.f32 %v251_v24  ;;  %v255_v37 = vadd.f32 1.0, %v254_v27  ;;  %vm904_vm0 = vcmp.lt.f32.partialorder %v257_v38, 0.0004427343 }
  0x69   : > { %542 = vlog2.f32 %v260_v25  ;;  %v264_v39 = vadd.f32 1.0, %v263_v29  ;;  %vm908_vm1 = vcmp.lt.f32.partialorder %v266_v41, 0.0004427343 }
  0x6a   : > { %v256_v49 = vmul.f32 %v533_v22, %v255_v37 }
  0x6b   : > { %v265_v52 = vmul.f32 %v535_v23, %v264_v39 }
  0x6c   : > { %v537_v26 = vpop.eup %536 }
  0x6d   : > { %v539_v28 = vpop.eup %538  ;;  %v285_v30 = vadd.f32 1.0, %v537_v26 }
  0x6e   : > { %v286_v31 = vadd.f32 1.0, %v539_v28 }
  0x6f   : > { %544 = vrcp.f32 %v285_v30 }
  0x70   : > { %546 = vrcp.f32 %v286_v31 }
  0x72   : > { %v541_v40 = vpop.eup %540 }
  0x73   : > { %v543_v42 = vpop.eup %542  ;;  %v253_v48 = vmul.f32 0.6931472, %v541_v40 }
  0x74   : > { %v262_v51 = vmul.f32 0.6931472, %v543_v42 }
  0x75   : > { %v259_v58 = vsel %vm904_vm0, %v256_v49, %v253_v48 }
  0x76   : > { %v268_v60 = vsel %vm908_vm1, %v265_v52, %v262_v51  ;;  %v269_v0 = vadd.f32 %v259_v58, %v249_v54 }
  0x77   : > { %v270_v4 = vadd.f32 %v268_v60, %v250_v57 }
  0x79   : > { %v545_v59 = vpop.eup %544 }
  0x7a   : > { %v547_v61 = vpop.eup %546  ;;  %v293_v62 = vmul.f32 %v545_v59, %v537_v26 }
  0x7b   : > { %v294_v1 = vmul.f32 %v547_v61, %v539_v28 }
  0x7c   : > { %v295_v5 = vsel %vm291_vm2, %v293_v62, %v545_v59 }
  0x7d   : > { %v296_v6 = vsel %vm292_vm3, %v294_v1, %v547_v61  ;;  %v297_v7 = vmul.f32 %v295_v5, %v295_v5 }
  0x7e   : > { %v298_v8 = vmul.f32 %v296_v6, %v296_v6 }
  0x7f   : > { %v299_v9 = vmul.f32 %v297_v7, %v269_v0 }
  0x80   : > { %v300_v10 = vmul.f32 %v298_v8, %v270_v4 }
  0x81   : > { %v311_v11 = vsel %vm309_vm4, %v299_v9, 0.0 }
  0x82   : > { %v312_v12 = vsel %vm310_vm5, %v300_v10, 0.0  ;;  %v316_v13 = vsel %vm315_vm6, %v311_v11, 0.0 }
  0x83   : > { %v317_v14 = vsel %vm315_vm6, %v312_v12, 0.0 }
  0x84   : > { %v318_v15 = vadd.f32 %v317_v14, %v316_v13 }
  0x86   : > { %321 = vst [vmem:[%s219_s19] sm:$0xff] %v318_v15 }
  0x87   : > { %621 = shalt.err (!%p618_p11)
}
  0x88   : > { %s622_s4 = scalar_lea.hbm %s923_s15, 128  ;;  %s626_s5 = scalar_lea.hbm %s974_s2, 256 }
  0x89   : > { %p623_p1 = scmp.ne.s32.totalorder %s923_s15, %s622_s4  ;;  %p627_p5 = scmp.lt.u32.totalorder %s923_s15, %s974_s2 }
  0x8a   : > { %p628_p4 = scmp.lt.u32.totalorder %s626_s5, %s622_s4  ;;  %p630_p0 = scmp.lt.u32.totalorder %s622_s4, %s923_s15 }
  0x8b   : > { %p624_p6 = pnand %p623_p1, %p989_p3 }
  0x8c   : > { %p629_p8 = por %p628_p4, %p627_p5 }
  0x8d   : > { %p625_p2 = pneg %p624_p6 }
  0x8e   : > { %p631_p12 = por %p630_p0, %p629_p8 }
  0x90   : > { %p632_p13 = pnand %p631_p12, %p625_p2 }
  0x92   : > { %635 = shalt.err (!%p632_p13)
}
  0x93   : > { %466 = dma.vmem_to_hbm [thread:$0]  (%p989_p3), %s925_s28, 128, %s923_s15, %s323_s26  }
  0x94 PF: > { %s348_s21 = sand.u32 1, %s674_s9   ;;  %p990_p7 = scmp.ne.s32.totalorder %s980_s24, 0 }
  0x95   : > { %p991_p10 = scmp.ge.s32.totalorder %s694_s14, 2  ;;  %s349_s8 = scalar_lea.sflag [#allocation4], %s348_s21 }
  0x97   : > { %p476_p9 = pnand %p991_p10, %p990_p7 }
  0x99   : > { %669 = dma.done.wait (!%p476_p9), %s349_s8, 128  }
  0x9a   : > { %671 = vsyncadd (!%p476_p9), %s349_s8, 4294967168  ;;  %s21_s14 = sadd.s32 1, %s694_s14   ;;  %s992_s9 = smov %s678_s10 }
  0x9b   : > { %p18_p11 = scmp.ge.s32.totalorder %s21_s14, 4   ;;  %s993_s10 = smov %s682_s11 }
  0x9c   : > { %s994_s11 = smov %s772_s23  ;;  %s995_s12 = smov %s690_s13 }
  0x9d   : > { %s996_s13 = smov %s998_s17  ;;  %20 = sbr.rel (!%p18_p11) target bundleno = 8 (0x8), region = 90 }
  0xa4   :  { %354 = vsyncpa [#allocation3], 1 }
  0xa5   :  { %356 = vsyncpa [#allocation3 + $0x1], 1 }
  0xa6   :  { %357 = vsyncpa [#allocation6], 1 }
  0xa7   :  { %359 = vsyncpa [#allocation6 + $0x1], 1 }
  0xa8   :  { %360 = vsyncpa [#allocation4], 1 }
  0xa9   :  { %362 = vsyncpa [#allocation4 + $0x1], 1 }

</bundles_post_ra>
